<compile_context>
chip_gen: v7x
topology: tpu7x:2x2x1
jax: 0.10.0
libtpu: 0.0.40
codegen_flags: <defaults>
</compile_context>

<pallas_src>
import functools
import math

import jax
import jax.numpy as jnp
from jax.experimental import pallas as pl
from jax.experimental.pallas import tpu as pltpu


def _round_up(x, m):
    return ((x + m - 1) // m) * m


def _hw_caps():
    """(tm_cap, tk_cap, tn_cap): larger tiles on 128 MiB-VMEM parts (v5e/v6e),
    conservative tiles on 64 MiB parts (v7x).  Falls back to the conservative
    set if the hardware query is unavailable."""
    vmem = 64 * 2 ** 20
    try:
        info = pltpu.get_tpu_info()
        vmem = int(getattr(info, "vmem_capacity_bytes", vmem))
    except Exception:
        pass
    if vmem >= 96 * 2 ** 20:
        return 512, 1024, 2048
    return 256, 512, 1024


def _adj_matmul_kernel(n_rows, n_cols, tm, tk, ragged_m, ragged_k, need_flag,
                       compute_dtype, adj_ref, s_ref, *out_refs):
    """out[i,j] = sum_k adj[i,k] @ support[k,j]; accumulate in o_ref (f32).

    Also OR-reduces (as max|adj|) each adjacency tile into a per-(i,j) flag
    block so the wrapper can gate the bias without re-reading adj.
    """
    o_ref = out_refs[0]
    flag_ref = out_refs[1] if need_flag else None

    i = pl.program_id(0)
    k = pl.program_id(2)
    first_k = k == 0

    a = adj_ref[...]                                    # HBM-native dtype tile

    # Statically-gated masking of ragged tile edges (VPU work, negligible vs
    # the MXU matmul).  Column masking guards the matmul against stale VMEM in
    # the partial last k block; row masking only matters for the flag.
    mask = None
    if ragged_k:
        col = jax.lax.broadcasted_iota(jnp.int32, a.shape, 1)
        mask = col < (n_cols - k * tk)
    if ragged_m and need_flag:
        row = jax.lax.broadcasted_iota(jnp.int32, a.shape, 0)
        rmask = row < (n_rows - i * tm)
        mask = rmask if mask is None else (mask & rmask)
    if mask is not None:
        a = jnp.where(mask, a, 0.0)

    @pl.when(first_k)
    def _init():
        o_ref[...] = jnp.zeros_like(o_ref)
        if need_flag:
            flag_ref[...] = jnp.zeros_like(flag_ref)

    # Cast the adj tile on the VPU (hidden under the MXU); f32 accumulation
    # directly into the resident output block.
    o_ref[...] += jnp.dot(a.astype(compute_dtype), s_ref[...],
                          preferred_element_type=jnp.float32)

    if need_flag:
        # max|adj| over the valid region of this tile -> (1, 1), broadcast into
        # the per-(i, j) flag block (kept per-block so megacore sharding of the
        # parallel axes never shares a flag buffer between cores).
        tile_max = jnp.max(jnp.max(jnp.abs(a), axis=1, keepdims=True),
                           axis=0, keepdims=True)
        flag_ref[...] = jnp.maximum(flag_ref[...],
                                    tile_max.astype(flag_ref.dtype))


@functools.partial(jax.jit, static_argnames=("compute_dtype",))
def hgat_graph_convolution(inputs, adj, weight, bias=None, global_W=None,
                           compute_dtype=jnp.bfloat16):
    """output = adj @ (inputs @ weight [@ global_W]) [+ bias].

    Empty adjacency (no non-zeros anywhere) -> all zeros, matching the torch
    sparse `_values()` fast path.  The big adj matmul is a single Pallas
    kernel; the tiny input projection is hoisted and done once in f32.
    """
    M, N = adj.shape
    Nx, F_in = inputs.shape
    if N != Nx:
        raise ValueError(f"adj cols ({N}) must match inputs rows ({Nx})")

    # support = inputs @ weight (@ global_W), computed once in f32 (tiny vs
    # the N x N adjacency matmul) and handed to the kernel in compute dtype.
    if global_W is None:
        w_eff = weight
    else:
        w_eff = jnp.dot(weight, global_W, preferred_element_type=jnp.float32)
    F_out = w_eff.shape[-1]
    need_flag = bias is not None
    if need_flag and bias.shape[-1] != F_out:
        raise ValueError("bias width must match the final output width")
    support = jnp.dot(inputs, w_eff, preferred_element_type=jnp.float32)

    tm_cap, tk_cap, tn_cap = _hw_caps()

    # k axis: reduction over nodes.  Full dim if it fits the cap (no ragged
    # edge), otherwise a lane-aligned cap with an in-kernel mask on the edge.
    tk = N if N <= tk_cap else tk_cap
    gk = pl.cdiv(N, tk)
    ragged_k = (N % tk) != 0
    Kp = gk * tk

    # j axis: output features, lane-dense (multiple of 128); keep the whole
    # feature dim resident whenever it fits so adj is streamed exactly once.
    Op = _round_up(F_out, 128)
    tn = min(Op, tn_cap)
    gj = pl.cdiv(Op, tn)

    # i axis: output rows.  If the grid would be (1, 1, gk), split the rows so
    # a dual-TensorCore part (v7x) gets >= 2 parallel blocks (cheap elsewhere).
    tm = min(_round_up(M, 8), tm_cap)
    gi = pl.cdiv(M, tm)
    if gi == 1 and gj == 1 and M >= 32:
        tm = _round_up(pl.cdiv(M, 2), 8)
        gi = pl.cdiv(M, tm)
    ragged_m = (M % tm) != 0

    # Support: cast once, zero-pad to (Kp, Op) (small array, cheap) so the
    # reduction edge and the lane padding contribute exact zeros.
    s_c = support.astype(compute_dtype)
    if Kp != N or Op != F_out:
        s_c = jnp.pad(s_c, ((0, Kp - N), (0, Op - F_out)))

    out_shapes = [jax.ShapeDtypeStruct((M, F_out), jnp.float32)]
    out_specs = [pl.BlockSpec((tm, tn), lambda i, j, k: (i, j))]
    if need_flag:
        # One (8, 128) flag block per (i, j) grid cell (legal tile shape, no
        # cross-core sharing under megacore "parallel" sharding).
        out_shapes.append(jax.ShapeDtypeStruct((gi * 8, gj * 128), jnp.float32))
        out_specs.append(pl.BlockSpec((8, 128), lambda i, j, k: (i, j)))

    adj_isize = jnp.dtype(adj.dtype).itemsize
    csize = jnp.dtype(compute_dtype).itemsize
    est_vmem = (2 * tm * tk * adj_isize      # adj double buffer (HBM dtype)
                + 2 * tk * tn * csize        # support double buffer
                + 2 * tm * tn * 4            # resident / double-buffered out
                + tm * tk * (4 + csize)      # in-kernel mask + cast temporaries
                + tm * tn * 4)               # matmul result temporary
    vmem_limit = max(int(est_vmem * 3 // 2), 32 * 2 ** 20)

    flops = 2 * M * N * Op
    bytes_accessed = int(M * N * adj_isize * gj     # adj streamed gj times
                         + Kp * Op * csize * gi     # support streamed per i
                         + M * F_out * 4)           # output writeback

    kernel = functools.partial(_adj_matmul_kernel, M, N, tm, tk,
                               ragged_m, ragged_k, need_flag, compute_dtype)

    results = pl.pallas_call(
        kernel,
        out_shape=tuple(out_shapes),
        grid_spec=pltpu.PrefetchScalarGridSpec(
            num_scalar_prefetch=0,
            grid=(gi, gj, gk),
            in_specs=[
                pl.BlockSpec((tm, tk), lambda i, j, k: (i, k)),   # adj (native)
                pl.BlockSpec((tk, tn), lambda i, j, k: (k, j)),   # support
            ],
            out_specs=tuple(out_specs),
        ),
        compiler_params=pltpu.CompilerParams(
            dimension_semantics=("parallel", "parallel", "arbitrary"),
            vmem_limit_bytes=vmem_limit),
        cost_estimate=pl.CostEstimate(flops=flops, transcendentals=0,
                                      bytes_accessed=bytes_accessed),
    )(adj, s_c)

    if not isinstance(results, (tuple, list)):
        results = (results,)

    out = results[0]
    if need_flag:
        # torch-sparse semantics: an all-zero adjacency returns zeros (no
        # bias).  The matmul is already exactly zero in that case, so only the
        # bias needs gating -- by the in-kernel flag, not an extra adj pass.
        nonzero = jnp.any(results[1] > 0)
        out = out + nonzero.astype(out.dtype) * bias.astype(out.dtype)
    return out


class HGATGraphConvolutionPallas:
    """JAX/Pallas re-implementation of HGATGraphConvolution."""

    def __init__(self, in_features, out_features, bias=True, key=None,
                 compute_dtype=jnp.bfloat16):
        self.in_features = in_features
        self.out_features = out_features
        self.compute_dtype = compute_dtype
        if key is None:
            key = jax.random.PRNGKey(0)
        kw, kb = jax.random.split(key)
        stdv = 1.0 / math.sqrt(out_features)
        self.weight = jax.random.uniform(
            kw, (in_features, out_features), jnp.float32, -stdv, stdv)
        self.bias = (jax.random.uniform(kb, (out_features,), jnp.float32,
                                        -stdv, stdv) if bias else None)

    def __call__(self, inputs, adj, global_W=None):
        return hgat_graph_convolution(inputs, adj, self.weight, self.bias,
                                      global_W,
                                      compute_dtype=self.compute_dtype)


def _reference(inputs, adj, weight, bias, global_W=None):
    support = inputs @ weight
    if global_W is not None:
        support = support @ global_W
    out = adj @ support
    if bias is not None:
        out = out + bias
    return out


def _check(name, out, ref, tol=5e-2):
    assert out.shape == ref.shape, f"{name}: shape {out.shape} vs {ref.shape}"
    err = float(jnp.max(jnp.abs(out - ref)))
    scale = max(float(jnp.max(jnp.abs(ref))), 1.0)
    assert err <= tol * scale, f"{name}: max|err|={err} vs scale={scale}"


if __name__ == "__main__":
    key = jax.random.PRNGKey(0)
    k_x, k_adj, k_mod, k_gw, k_x2, k_adj2 = jax.random.split(key, 6)

    # Small shapes consistent with the module.
    n_nodes, in_features, out_features = 16, 32, 32
    inputs = jax.random.normal(k_x, (n_nodes, in_features), jnp.float32)
    adj_raw = jax.random.uniform(k_adj, (n_nodes, n_nodes), jnp.float32)
    adj = jnp.where(adj_raw > 0.7, adj_raw, 0.0)

    module = HGATGraphConvolutionPallas(in_features, out_features,
                                        bias=True, key=k_mod)

    # Main path: global_W=None, bias present.
    out = jax.block_until_ready(module(inputs, adj))
    _check("no_global_W", out, _reference(inputs, adj, module.weight,
                                          module.bias))

    # Path with global_W (folded into the weight before the projection).
    global_W = jax.random.normal(k_gw, (out_features, out_features),
                                 jnp.float32)
    out_gw = jax.block_until_ready(module(inputs, adj, global_W))
    _check("global_W", out_gw, _reference(inputs, adj, module.weight,
                                          module.bias, global_W))

    # No-bias path (no flag output in the kernel).
    module_nb = HGATGraphConvolutionPallas(in_features, out_features,
                                           bias=False, key=k_mod)
    out_nb = jax.block_until_ready(module_nb(inputs, adj))
    _check("no_bias", out_nb, _reference(inputs, adj, module_nb.weight, None))

    # Empty adjacency -> exact zeros (torch sparse fast-path semantics), even
    # with bias present.
    out_empty = jax.block_until_ready(module(inputs, jnp.zeros_like(adj)))
    assert bool(jnp.all(out_empty == 0.0))

    # Larger, non-tile-multiple shapes: exercises ragged row/col masking,
    # multi-block grids, k-axis accumulation and the lane-padded F_out path on
    # every supported tile-cap configuration.
    n2, fin2, fout2 = 1152, 96, 160
    module2 = HGATGraphConvolutionPallas(fin2, fout2, bias=True, key=k_mod)
    x2 = jax.random.normal(k_x2, (n2, fin2), jnp.float32)
    a2_raw = jax.random.uniform(k_adj2, (n2, n2), jnp.float32)
    a2 = jnp.where(a2_raw > 0.7, a2_raw, 0.0)
    out2 = jax.block_until_ready(module2(x2, a2))
    _check("large_ragged", out2, _reference(x2, a2, module2.weight,
                                            module2.bias))

    print("KERNEL_OK")
</pallas_src>

<mosaic_0001>
module attributes {stable_mosaic.version = 11 : i64} {
  func.func @_adj_matmul_kernel(%arg0: i32, %arg1: i32, %arg2: i32, %arg3: memref<16x16xf32, #tpu.memory_space<vmem>>, %arg4: memref<16x128xbf16, #tpu.memory_space<vmem>>, %arg5: memref<16x128xf32, #tpu.memory_space<vmem>>, %arg6: memref<8x128xf32, #tpu.memory_space<vmem>>) attributes {dimension_semantics = [#tpu.dimension_semantics<parallel>, #tpu.dimension_semantics<parallel>, #tpu.dimension_semantics<arbitrary>], iteration_bounds = array<i64: 1, 1, 1>, scalar_prefetch = 0 : i64, scratch_operands = 0 : i64, tpu.core_type = #tpu.core_type<tc>, window_params = [{transform_indices = @transform_0, window_bounds = array<i64: 16, 16>}, {transform_indices = @transform_1, window_bounds = array<i64: 16, 128>}, {transform_indices = @transform_2, window_bounds = array<i64: 16, 128>}, {transform_indices = @transform_3, window_bounds = array<i64: 8, 128>}]} {
    %c0_i32 = arith.constant 0 : i32
    %0 = arith.cmpi eq, %arg2, %c0_i32 : i32
    %c0 = arith.constant 0 : index
    %c0_0 = arith.constant 0 : index
    %1 = vector.load %arg3[%c0, %c0_0] : memref<16x16xf32, #tpu.memory_space<vmem>>, vector<16x16xf32>
    %2 = arith.extui %0 : i1 to i32
    %c0_i32_1 = arith.constant 0 : i32
    %3 = arith.cmpi ne, %2, %c0_i32_1 : i32
    scf.if %3 {
      %cst_14 = arith.constant 0.000000e+00 : f32
      %19 = vector.broadcast %cst_14 : f32 to vector<16x128xf32>
      %c0_15 = arith.constant 0 : index
      %c0_16 = arith.constant 0 : index
      %20 = vector.load %arg5[%c0_15, %c0_16] : memref<16x128xf32, #tpu.memory_space<vmem>>, vector<16x128xf32>
      tpu.vector_store %arg5[%c0_15, %c0_16], %19 {strides = array<i32>} : memref<16x128xf32, #tpu.memory_space<vmem>>, vector<16x128xf32>,
      %cst_17 = arith.constant 0.000000e+00 : f32
      %21 = vector.broadcast %cst_17 : f32 to vector<8x128xf32>
      %c0_18 = arith.constant 0 : index
      %c0_19 = arith.constant 0 : index
      %22 = vector.load %arg6[%c0_18, %c0_19] : memref<8x128xf32, #tpu.memory_space<vmem>>, vector<8x128xf32>
      tpu.vector_store %arg6[%c0_18, %c0_19], %21 {strides = array<i32>} : memref<8x128xf32, #tpu.memory_space<vmem>>, vector<8x128xf32>,
    } else {
    }
    %c0_2 = arith.constant 0 : index
    %c0_3 = arith.constant 0 : index
    %4 = vector.load %arg5[%c0_2, %c0_3] : memref<16x128xf32, #tpu.memory_space<vmem>>, vector<16x128xf32>
    %5 = arith.truncf %1 : vector<16x16xf32> to vector<16x16xbf16>
    %c0_4 = arith.constant 0 : index
    %c0_5 = arith.constant 0 : index
    %6 = vector.load %arg4[%c0_4, %c0_5] : memref<16x128xbf16, #tpu.memory_space<vmem>>, vector<16x128xbf16>
    %cst = arith.constant dense<0.000000e+00> : vector<16x128xf32>
    %7 = tpu.matmul %5, %6, %cst {dimension_numbers = #tpu.dot_dimension_numbers<[1], [0], [0], [1], [0, 0, 1, 1], [], []>} : vector<16x16xbf16>, vector<16x128xbf16>, vector<16x128xf32> -> vector<16x128xf32>
    %8 = arith.addf %4, %7 : vector<16x128xf32>
    %c0_6 = arith.constant 0 : index
    %c0_7 = arith.constant 0 : index
    %9 = vector.load %arg5[%c0_6, %c0_7] : memref<16x128xf32, #tpu.memory_space<vmem>>, vector<16x128xf32>
    tpu.vector_store %arg5[%c0_6, %c0_7], %8 {strides = array<i32>} : memref<16x128xf32, #tpu.memory_space<vmem>>, vector<16x128xf32>,
    %10 = math.absf %1 : vector<16x16xf32>
    %cst_8 = arith.constant dense<0xFF800000> : vector<16xf32>
    %11 = vector.multi_reduction <maximumf>, %10, %cst_8 [1] : vector<16x16xf32> to vector<16xf32>
    %12 = vector.shape_cast %11 : vector<16xf32> to vector<16x1xf32>
    %cst_9 = arith.constant dense<0xFF800000> : vector<1xf32>
    %13 = vector.multi_reduction <maximumf>, %12, %cst_9 [0] : vector<16x1xf32> to vector<1xf32>
    %14 = vector.shape_cast %13 : vector<1xf32> to vector<1x1xf32>
    %c0_10 = arith.constant 0 : index
    %c0_11 = arith.constant 0 : index
    %15 = vector.load %arg6[%c0_10, %c0_11] : memref<8x128xf32, #tpu.memory_space<vmem>>, vector<8x128xf32>
    %16 = vector.broadcast %14 : vector<1x1xf32> to vector<8x128xf32>
    %17 = arith.maximumf %15, %16 : vector<8x128xf32>
    %c0_12 = arith.constant 0 : index
    %c0_13 = arith.constant 0 : index
    %18 = vector.load %arg6[%c0_12, %c0_13] : memref<8x128xf32, #tpu.memory_space<vmem>>, vector<8x128xf32>
    tpu.vector_store %arg6[%c0_12, %c0_13], %17 {strides = array<i32>} : memref<8x128xf32, #tpu.memory_space<vmem>>, vector<8x128xf32>,
    return
  }
  func.func @transform_0(%arg0: i32, %arg1: i32, %arg2: i32) -> (i32, i32) {
    %c0_i32 = arith.constant 0 : i32
    return %arg0, %arg2 : i32, i32
  }
  func.func @transform_1(%arg0: i32, %arg1: i32, %arg2: i32) -> (i32, i32) {
    %c0_i32 = arith.constant 0 : i32
    return %arg2, %arg1 : i32, i32
  }
  func.func @transform_2(%arg0: i32, %arg1: i32, %arg2: i32) -> (i32, i32) {
    %c0_i32 = arith.constant 0 : i32
    return %arg0, %arg1 : i32, i32
  }
  func.func @transform_3(%arg0: i32, %arg1: i32, %arg2: i32) -> (i32, i32) {
    %c0_i32 = arith.constant 0 : i32
    return %arg0, %arg1 : i32, i32
  }
}

</mosaic_0001>

<bundles_post_ra>
// kernel: hgat_graph_convolution.1
= control target key start
LH: loop header
LB: loop body
LE: loop exit
PB: predicated region body
PF: predicated region fallthrough
CT: control target
= control target key end

     0   :  { %v122_v0 = vmov 0.0   ;;  %vm123_vm0 = vmmov 0   ;;  %vm34_vm1 = vcmask 130048   ;;  %s162_s1 = inlined_call_operand.vmem [shape: bf16[16,128], index: 1, kind: input, shape index: {}]   ;;  %s163_s0 = inlined_call_operand.vmem [shape: f32[16,16], index: 0, kind: input, shape index: {}]   ;;  %s164_s3 = inlined_call_operand.vmem [shape: f32[8,128], index: 3, kind: output, shape index: {1}]   ;;  %s165_s2 = inlined_call_operand.vmem [shape: f32[16,32], index: 2, kind: output, shape index: {0}]  }
   0x1   :  { %113 = vmatprep.subr.bf16.mxu0 %v122_v0  ;;  %v121_v1 = vld [vmem:[%s162_s1] sm:$0xff]   ;;  %115 = vmatprep.mubr.msk.bf16.mxu0 %vm123_vm0, %v122_v0  ;;  %v16_v3 = vld [vmem:[%s163_s0 + $0x8] sm:$0xff] }
   0x2   :  { %v15_v2 = vld [vmem:[%s163_s0] sm:$0xff]  ;;  %114 = vmatpush3.bf16.msra.mxu0 %v121_v1  ;;  %v84_v6 = vand.u32 2147483647, %v16_v3 }
   0x3   :  { %v25_v4 = vpack.c.bf16 %v16_v3, %v15_v2  ;;  %v83_v5 = vand.u32 2147483647, %v15_v2 }
   0x4   :  { %v88_v8 = vsel %vm34_vm1, %v84_v6, -inf }
   0x5   :  { %v85_v7 = vsel %vm34_vm1, %v83_v5, -inf  ;;  %116 = vmatmul.mubr.msk.bf16.vlgmr.msra.gmra.mrb[0].mxu0 %vm34_vm1, %v25_v4 }
   0x6   :  { %86 = vmax.xlane.f32.xlu0 %v85_v7 }
   0xa   :  { %89 = vmax.xlane.f32.xlu0 %v88_v8 }
  0x93   :  { %v87_v9 = vpop.xlane.xlu0 %86 }
  0x97   :  { %v90_v10 = vpop.xlane.xlu0 %89 }
  0x98   :  { %v91_v11 = vmax.f32 %v87_v9, %v90_v10 }
  0x9a   :  { %v92_v12 = vrot.slane %v91_v11, 4 }
  0x9c   :  { %v93_v13 = vmax.f32 %v91_v11, %v92_v12 }
  0x9e   :  { %v94_v14 = vrot.slane %v93_v13, 2 }
  0xa0   :  { %v95_v15 = vmax.f32 %v93_v13, %v94_v14 }
  0xa2   :  { %v96_v16 = vrot.slane %v95_v15, 1 }
  0xa4   :  { %v97_v17 = vmax.f32 %v95_v15, %v96_v16 }
  0xa6   :  { %v99_v18 = vmax.f32 %v97_v17, 0.0 }
  0xa8   :  { %100 = vst [vmem:[%s164_s3] sm:$0xff] %v99_v18 }
  0xd8   :  { %v72_v19 = vpop.f32.mrb[0].mxu0 }
  0xd9   :  { %v117_v20 = vpop.f32.mrb[1].mxu0  ;;  %81 = vst [vmem:[%s165_s2] sm:$0xff] %v72_v19 }
  0xda   :  { %v75_v21 = vpop.f32.mrb[2].mxu0 }
  0xdb   :  { %v118_v22 = vpop.f32.mrb[3].mxu0  ;;  %82 = vst [vmem:[%s165_s2 + $0x8] sm:$0xff] %v75_v21 }

</bundles_post_ra>
